<compile_context>
chip_gen: v7x
topology: tpu7x:2x2x1
jax: 0.10.0
libtpu: 0.0.40
codegen_flags: <defaults>
</compile_context>

<pallas_src>
import functools

import jax
import jax.numpy as jnp
from jax.experimental import pallas as pl
from jax.experimental.pallas import tpu as pltpu


def _ordinal_kernel(cut_ref, pred_ref, label_ref, *out_refs,
                    n_cls, eps, write_lik, lik_dtype):
    if write_lik:
        lik_ref, psum_ref = out_refs
    else:
        (psum_ref,) = out_refs

    pred = pred_ref[...]                       # (B, TS) float32
    label = label_ref[...]                     # (B, TS) int32

    s_prev = jnp.zeros_like(pred)              # sigmoid at implicit -inf cutpoint
    lik_sel = jnp.ones_like(pred)              # log(1)=0 for out-of-range labels
    # n_cls is small and static -> unrolled Python loop (one VPU pass per class).
    for k in range(n_cls):
        if k < n_cls - 1:
            s_k = jax.nn.sigmoid(cut_ref[0, k] - pred)
        else:
            s_k = jnp.ones_like(pred)          # sigmoid at implicit +inf cutpoint
        lik = jnp.clip(s_k - s_prev, eps, 1.0 - eps)
        if write_lik:
            lik_ref[k, :, :] = lik.astype(lik_dtype)
        lik_sel = jnp.where(label == k, lik, lik_sel)
        s_prev = s_k

    # Single log() pass + sublane-only reduction.  Lane partials are summed in
    # the wrapper, which removes the cross-step scalar dependency and lets the
    # grid axis run "parallel" across TensorCores.
    partial = jnp.sum(jnp.log(lik_sel), axis=0, keepdims=True)   # (1, TS)
    psum_ref[...] = partial[None]                                 # (1, 1, TS)


def _pick_block_s(S, B, n_cls, lik_bytes, write_lik, budget_bytes):
    """Largest block along S that fits the (double-buffered) VMEM budget."""
    per_col = 2 * B * (4 + 4 + (n_cls * lik_bytes if write_lik else 0)) + 2 * 4
    max_ts = max(128, (budget_bytes // per_col) // 128 * 128)
    if S <= max_ts:
        return S
    ts = None
    cand = 128
    while cand <= min(S, max_ts):
        if S % cand == 0:
            ts = cand
        cand += 128
    if ts is None:
        # No multiple-of-128 divisor under budget; fall back to the full axis.
        ts = S
    return ts


def ordinal_regression_loss(pred, label, cutpoints, *, n_cls, eps=1e-15,
                            block_s=None, compute_likelihoods=True,
                            likelihood_layout="bsc", lik_dtype=jnp.float32,
                            vmem_budget_bytes=24 * 1024 * 1024):
    """Returns (loss, likelihoods) matching the PyTorch module forward.

    pred:  (B, S) float32
    label: (B, S) int32 in [0, n_cls), or None (loss is then 0.0)
    cutpoints: (n_cls - 1,) float32 parameter
    likelihoods: (B, S, n_cls) by default ("bsc"); "cbs" returns (n_cls, B, S)
        without the wrapper transpose; compute_likelihoods=False skips them.
    """
    B, S = pred.shape
    pred = pred.astype(jnp.float32)
    label_is_none = label is None
    if label_is_none:
        label = jnp.zeros((B, S), jnp.int32)
    else:
        label = label.astype(jnp.int32)

    lik_bytes = jnp.dtype(lik_dtype).itemsize
    if block_s is None:
        block_s = _pick_block_s(S, B, n_cls, lik_bytes, compute_likelihoods,
                                vmem_budget_bytes)
    assert S % block_s == 0, "S must be a multiple of the chosen block"
    grid_s = S // block_s

    kern = functools.partial(_ordinal_kernel, n_cls=n_cls, eps=float(eps),
                             write_lik=compute_likelihoods, lik_dtype=lik_dtype)

    out_shape = []
    out_specs = []
    if compute_likelihoods:
        out_shape.append(jax.ShapeDtypeStruct((n_cls, B, S), lik_dtype))
        out_specs.append(pl.BlockSpec((n_cls, B, block_s), lambda j: (0, 0, j)))
    out_shape.append(jax.ShapeDtypeStruct((grid_s, 1, block_s), jnp.float32))
    out_specs.append(pl.BlockSpec((1, 1, block_s), lambda j: (j, 0, 0)))

    outs = pl.pallas_call(
        kern,
        out_shape=tuple(out_shape),
        grid_spec=pltpu.PrefetchScalarGridSpec(
            num_scalar_prefetch=0,
            grid=(grid_s,),
            in_specs=[
                pl.BlockSpec(memory_space=pltpu.MemorySpace.SMEM),   # cutpoints
                pl.BlockSpec((B, block_s), lambda j: (0, j)),        # pred tile
                pl.BlockSpec((B, block_s), lambda j: (0, j)),        # label tile
            ],
            out_specs=tuple(out_specs),
        ),
        compiler_params=pltpu.CompilerParams(
            dimension_semantics=("parallel",),       # disjoint outputs per step
            vmem_limit_bytes=48 * 1024 * 1024,
        ),
    )(cutpoints.reshape(1, -1).astype(jnp.float32), pred, label)

    if compute_likelihoods:
        lik_cbs, psums = outs
    else:
        (psums,) = outs

    if label_is_none:
        loss = jnp.float32(0.0)
    else:
        loss = -jnp.sum(psums) / jnp.float32(B * S)

    if not compute_likelihoods:
        return loss, None
    if likelihood_layout == "cbs":
        return loss, lik_cbs
    # PyTorch-compatible (B, S, n_cls) layout. Costs an extra pass over the
    # likelihood tensor; use layout="cbs" or compute_likelihoods=False when
    # downstream code does not need this exact layout.
    likelihoods = jnp.transpose(lik_cbs, (1, 2, 0))
    return loss, likelihoods


def _reference(pred, label, cutpoints, eps):
    sig = jax.nn.sigmoid(cutpoints - pred[..., None])
    link = sig[..., 1:] - sig[..., :-1]
    link = jnp.concatenate([sig[..., :1], link, 1.0 - sig[..., -1:]], axis=-1)
    lik = jnp.clip(link, eps, 1.0 - eps)
    nll = jnp.log(lik)
    gathered = jnp.take_along_axis(nll, label[..., None], axis=-1)
    return -gathered.mean(), lik


if __name__ == "__main__":
    n_cls = 5
    scale = 20.0
    eps = 1e-15

    # Deterministic parameter init (matches the PyTorch __init__ formula).
    n_cut = n_cls - 1
    cutpoints = (jnp.arange(n_cut, dtype=jnp.float32) * scale / (n_cls - 2)
                 - scale / 2.0)

    key = jax.random.PRNGKey(0)
    kp, kl = jax.random.split(key)
    B, S = 8, 256
    pred = jax.random.normal(kp, (B, S), dtype=jnp.float32) * 5.0
    label = jax.random.randint(kl, (B, S), 0, n_cls, dtype=jnp.int32)

    ref_loss, ref_lik = _reference(pred, label, cutpoints, eps)

    # 1) Default path (auto block size -> full S here, PyTorch (B,S,n_cls) layout).
    loss, lik = ordinal_regression_loss(pred, label, cutpoints, n_cls=n_cls, eps=eps)
    loss, lik = jax.block_until_ready((loss, lik))
    assert jnp.allclose(loss, ref_loss, atol=1e-5, rtol=1e-5), (loss, ref_loss)
    assert jnp.allclose(lik, ref_lik, atol=1e-5, rtol=1e-5)

    # 2) Forced multi-block path (exercises the parallel grid + per-step partials).
    loss2, lik2 = ordinal_regression_loss(pred, label, cutpoints, n_cls=n_cls,
                                          eps=eps, block_s=128)
    loss2, lik2 = jax.block_until_ready((loss2, lik2))
    assert jnp.allclose(loss2, ref_loss, atol=1e-5, rtol=1e-5), (loss2, ref_loss)
    assert jnp.allclose(lik2, ref_lik, atol=1e-5, rtol=1e-5)

    # 3) Loss-only path (skips the n_cls-sized likelihood write entirely).
    loss3, lik3 = ordinal_regression_loss(pred, label, cutpoints, n_cls=n_cls,
                                          eps=eps, compute_likelihoods=False)
    loss3 = jax.block_until_ready(loss3)
    assert lik3 is None
    assert jnp.allclose(loss3, ref_loss, atol=1e-5, rtol=1e-5), (loss3, ref_loss)

    print("KERNEL_OK")
</pallas_src>

<mosaic_0001>
module attributes {stable_mosaic.version = 11 : i64} {
  func.func @_ordinal_kernel(%arg0: i32, %arg1: memref<1x4xf32, #tpu.memory_space<smem>>, %arg2: memref<8x256xf32, #tpu.memory_space<vmem>>, %arg3: memref<8x256xi32, #tpu.memory_space<vmem>>, %arg4: memref<5x8x256xf32, #tpu.memory_space<vmem>>, %arg5: memref<1x1x256xf32, #tpu.memory_space<vmem>>) attributes {dimension_semantics = [#tpu.dimension_semantics<parallel>], iteration_bounds = array<i64: 1>, scalar_prefetch = 0 : i64, scratch_operands = 0 : i64, tpu.core_type = #tpu.core_type<tc>, window_params = [{transform_indices = @transform_0, window_bounds = array<i64: 1, 4>}, {transform_indices = @transform_1, window_bounds = array<i64: 8, 256>}, {transform_indices = @transform_2, window_bounds = array<i64: 8, 256>}, {transform_indices = @transform_3, window_bounds = array<i64: 5, 8, 256>}, {transform_indices = @transform_4, window_bounds = array<i64: 1, 1, 256>}]} {
    %c0 = arith.constant 0 : index
    %c0_0 = arith.constant 0 : index
    %0 = vector.load %arg2[%c0, %c0_0] : memref<8x256xf32, #tpu.memory_space<vmem>>, vector<8x256xf32>
    %c0_1 = arith.constant 0 : index
    %c0_2 = arith.constant 0 : index
    %1 = vector.load %arg3[%c0_1, %c0_2] : memref<8x256xi32, #tpu.memory_space<vmem>>, vector<8x256xi32>
    %cst = arith.constant 0.000000e+00 : f32
    %2 = vector.broadcast %cst : f32 to vector<8x256xf32>
    %cst_3 = arith.constant 1.000000e+00 : f32
    %3 = vector.broadcast %cst_3 : f32 to vector<8x256xf32>
    %c0_4 = arith.constant 0 : index
    %c0_5 = arith.constant 0 : index
    %4 = memref.load %arg1[%c0_4, %c0_5] : memref<1x4xf32, #tpu.memory_space<smem>>
    %5 = vector.broadcast %4 : f32 to vector<8x256xf32>
    %6 = arith.subf %5, %0 : vector<8x256xf32>
    %7 = arith.negf %6 : vector<8x256xf32>
    %8 = math.exp %7 : vector<8x256xf32>
    %cst_6 = arith.constant 1.000000e+00 : f32
    %9 = vector.broadcast %cst_6 : f32 to vector<8x256xf32>
    %10 = arith.addf %9, %8 : vector<8x256xf32>
    %11 = arith.divf %9, %10 : vector<8x256xf32>
    %12 = arith.subf %11, %2 : vector<8x256xf32>
    %cst_7 = arith.constant 1.000000e-15 : f32
    %cst_8 = arith.constant 1.000000e+00 : f32
    %13 = vector.broadcast %cst_7 : f32 to vector<8x256xf32>
    %14 = arith.maximumf %13, %12 : vector<8x256xf32>
    %15 = vector.broadcast %cst_8 : f32 to vector<8x256xf32>
    %16 = arith.minimumf %15, %14 : vector<8x256xf32>
    %c0_9 = arith.constant 0 : index
    %c0_10 = arith.constant 0 : index
    %c0_11 = arith.constant 0 : index
    %17 = vector.load %arg4[%c0_9, %c0_10, %c0_11] : memref<5x8x256xf32, #tpu.memory_space<vmem>>, vector<1x8x256xf32>
    %18 = vector.shape_cast %17 : vector<1x8x256xf32> to vector<8x256xf32>
    %19 = vector.shape_cast %16 : vector<8x256xf32> to vector<1x8x256xf32>
    tpu.vector_store %arg4[%c0_9, %c0_10, %c0_11], %19 {strides = array<i32>} : memref<5x8x256xf32, #tpu.memory_space<vmem>>, vector<1x8x256xf32>,
    %c0_i32 = arith.constant 0 : i32
    %20 = vector.broadcast %c0_i32 : i32 to vector<8x256xi32>
    %21 = arith.cmpi eq, %1, %20 : vector<8x256xi32>
    %22 = arith.select %21, %16, %3 : vector<8x256xi1>, vector<8x256xf32>
    %c0_12 = arith.constant 0 : index
    %c1 = arith.constant 1 : index
    %23 = memref.load %arg1[%c0_12, %c1] : memref<1x4xf32, #tpu.memory_space<smem>>
    %24 = vector.broadcast %23 : f32 to vector<8x256xf32>
    %25 = arith.subf %24, %0 : vector<8x256xf32>
    %26 = arith.negf %25 : vector<8x256xf32>
    %27 = math.exp %26 : vector<8x256xf32>
    %cst_13 = arith.constant 1.000000e+00 : f32
    %28 = vector.broadcast %cst_13 : f32 to vector<8x256xf32>
    %29 = arith.addf %28, %27 : vector<8x256xf32>
    %30 = arith.divf %28, %29 : vector<8x256xf32>
    %31 = arith.subf %30, %11 : vector<8x256xf32>
    %cst_14 = arith.constant 1.000000e-15 : f32
    %cst_15 = arith.constant 1.000000e+00 : f32
    %32 = vector.broadcast %cst_14 : f32 to vector<8x256xf32>
    %33 = arith.maximumf %32, %31 : vector<8x256xf32>
    %34 = vector.broadcast %cst_15 : f32 to vector<8x256xf32>
    %35 = arith.minimumf %34, %33 : vector<8x256xf32>
    %c1_16 = arith.constant 1 : index
    %c0_17 = arith.constant 0 : index
    %c0_18 = arith.constant 0 : index
    %36 = vector.load %arg4[%c1_16, %c0_17, %c0_18] : memref<5x8x256xf32, #tpu.memory_space<vmem>>, vector<1x8x256xf32>
    %37 = vector.shape_cast %36 : vector<1x8x256xf32> to vector<8x256xf32>
    %38 = vector.shape_cast %35 : vector<8x256xf32> to vector<1x8x256xf32>
    tpu.vector_store %arg4[%c1_16, %c0_17, %c0_18], %38 {strides = array<i32>} : memref<5x8x256xf32, #tpu.memory_space<vmem>>, vector<1x8x256xf32>,
    %c1_i32 = arith.constant 1 : i32
    %39 = vector.broadcast %c1_i32 : i32 to vector<8x256xi32>
    %40 = arith.cmpi eq, %1, %39 : vector<8x256xi32>
    %41 = arith.select %40, %35, %22 : vector<8x256xi1>, vector<8x256xf32>
    %c0_19 = arith.constant 0 : index
    %c2 = arith.constant 2 : index
    %42 = memref.load %arg1[%c0_19, %c2] : memref<1x4xf32, #tpu.memory_space<smem>>
    %43 = vector.broadcast %42 : f32 to vector<8x256xf32>
    %44 = arith.subf %43, %0 : vector<8x256xf32>
    %45 = arith.negf %44 : vector<8x256xf32>
    %46 = math.exp %45 : vector<8x256xf32>
    %cst_20 = arith.constant 1.000000e+00 : f32
    %47 = vector.broadcast %cst_20 : f32 to vector<8x256xf32>
    %48 = arith.addf %47, %46 : vector<8x256xf32>
    %49 = arith.divf %47, %48 : vector<8x256xf32>
    %50 = arith.subf %49, %30 : vector<8x256xf32>
    %cst_21 = arith.constant 1.000000e-15 : f32
    %cst_22 = arith.constant 1.000000e+00 : f32
    %51 = vector.broadcast %cst_21 : f32 to vector<8x256xf32>
    %52 = arith.maximumf %51, %50 : vector<8x256xf32>
    %53 = vector.broadcast %cst_22 : f32 to vector<8x256xf32>
    %54 = arith.minimumf %53, %52 : vector<8x256xf32>
    %c2_23 = arith.constant 2 : index
    %c0_24 = arith.constant 0 : index
    %c0_25 = arith.constant 0 : index
    %55 = vector.load %arg4[%c2_23, %c0_24, %c0_25] : memref<5x8x256xf32, #tpu.memory_space<vmem>>, vector<1x8x256xf32>
    %56 = vector.shape_cast %55 : vector<1x8x256xf32> to vector<8x256xf32>
    %57 = vector.shape_cast %54 : vector<8x256xf32> to vector<1x8x256xf32>
    tpu.vector_store %arg4[%c2_23, %c0_24, %c0_25], %57 {strides = array<i32>} : memref<5x8x256xf32, #tpu.memory_space<vmem>>, vector<1x8x256xf32>,
    %c2_i32 = arith.constant 2 : i32
    %58 = vector.broadcast %c2_i32 : i32 to vector<8x256xi32>
    %59 = arith.cmpi eq, %1, %58 : vector<8x256xi32>
    %60 = arith.select %59, %54, %41 : vector<8x256xi1>, vector<8x256xf32>
    %c0_26 = arith.constant 0 : index
    %c3 = arith.constant 3 : index
    %61 = memref.load %arg1[%c0_26, %c3] : memref<1x4xf32, #tpu.memory_space<smem>>
    %62 = vector.broadcast %61 : f32 to vector<8x256xf32>
    %63 = arith.subf %62, %0 : vector<8x256xf32>
    %64 = arith.negf %63 : vector<8x256xf32>
    %65 = math.exp %64 : vector<8x256xf32>
    %cst_27 = arith.constant 1.000000e+00 : f32
    %66 = vector.broadcast %cst_27 : f32 to vector<8x256xf32>
    %67 = arith.addf %66, %65 : vector<8x256xf32>
    %68 = arith.divf %66, %67 : vector<8x256xf32>
    %69 = arith.subf %68, %49 : vector<8x256xf32>
    %cst_28 = arith.constant 1.000000e-15 : f32
    %cst_29 = arith.constant 1.000000e+00 : f32
    %70 = vector.broadcast %cst_28 : f32 to vector<8x256xf32>
    %71 = arith.maximumf %70, %69 : vector<8x256xf32>
    %72 = vector.broadcast %cst_29 : f32 to vector<8x256xf32>
    %73 = arith.minimumf %72, %71 : vector<8x256xf32>
    %c3_30 = arith.constant 3 : index
    %c0_31 = arith.constant 0 : index
    %c0_32 = arith.constant 0 : index
    %74 = vector.load %arg4[%c3_30, %c0_31, %c0_32] : memref<5x8x256xf32, #tpu.memory_space<vmem>>, vector<1x8x256xf32>
    %75 = vector.shape_cast %74 : vector<1x8x256xf32> to vector<8x256xf32>
    %76 = vector.shape_cast %73 : vector<8x256xf32> to vector<1x8x256xf32>
    tpu.vector_store %arg4[%c3_30, %c0_31, %c0_32], %76 {strides = array<i32>} : memref<5x8x256xf32, #tpu.memory_space<vmem>>, vector<1x8x256xf32>,
    %c3_i32 = arith.constant 3 : i32
    %77 = vector.broadcast %c3_i32 : i32 to vector<8x256xi32>
    %78 = arith.cmpi eq, %1, %77 : vector<8x256xi32>
    %79 = arith.select %78, %73, %60 : vector<8x256xi1>, vector<8x256xf32>
    %cst_33 = arith.constant 1.000000e+00 : f32
    %80 = vector.broadcast %cst_33 : f32 to vector<8x256xf32>
    %81 = arith.subf %80, %68 : vector<8x256xf32>
    %cst_34 = arith.constant 1.000000e-15 : f32
    %cst_35 = arith.constant 1.000000e+00 : f32
    %82 = vector.broadcast %cst_34 : f32 to vector<8x256xf32>
    %83 = arith.maximumf %82, %81 : vector<8x256xf32>
    %84 = vector.broadcast %cst_35 : f32 to vector<8x256xf32>
    %85 = arith.minimumf %84, %83 : vector<8x256xf32>
    %c4 = arith.constant 4 : index
    %c0_36 = arith.constant 0 : index
    %c0_37 = arith.constant 0 : index
    %86 = vector.load %arg4[%c4, %c0_36, %c0_37] : memref<5x8x256xf32, #tpu.memory_space<vmem>>, vector<1x8x256xf32>
    %87 = vector.shape_cast %86 : vector<1x8x256xf32> to vector<8x256xf32>
    %88 = vector.shape_cast %85 : vector<8x256xf32> to vector<1x8x256xf32>
    tpu.vector_store %arg4[%c4, %c0_36, %c0_37], %88 {strides = array<i32>} : memref<5x8x256xf32, #tpu.memory_space<vmem>>, vector<1x8x256xf32>,
    %c4_i32 = arith.constant 4 : i32
    %89 = vector.broadcast %c4_i32 : i32 to vector<8x256xi32>
    %90 = arith.cmpi eq, %1, %89 : vector<8x256xi32>
    %91 = arith.select %90, %85, %79 : vector<8x256xi1>, vector<8x256xf32>
    %92 = math.log %91 : vector<8x256xf32>
    %cst_38 = arith.constant dense<0.000000e+00> : vector<256xf32>
    %93 = vector.multi_reduction <add>, %92, %cst_38 [0] : vector<8x256xf32> to vector<256xf32>
    %94 = vector.shape_cast %93 : vector<256xf32> to vector<1x256xf32>
    %95 = vector.shape_cast %94 : vector<1x256xf32> to vector<1x1x256xf32>
    %c0_39 = arith.constant 0 : index
    %c0_40 = arith.constant 0 : index
    %c0_41 = arith.constant 0 : index
    %96 = vector.load %arg5[%c0_39, %c0_40, %c0_41] : memref<1x1x256xf32, #tpu.memory_space<vmem>>, vector<1x1x256xf32>
    tpu.vector_store %arg5[%c0_39, %c0_40, %c0_41], %95 {strides = array<i32>} : memref<1x1x256xf32, #tpu.memory_space<vmem>>, vector<1x1x256xf32>,
    return
  }
  func.func @transform_0(%arg0: i32) -> (i32, i32) {
    %c0_i32 = arith.constant 0 : i32
    %c0_i32_0 = arith.constant 0 : i32
    %c0_i32_1 = arith.constant 0 : i32
    return %c0_i32, %c0_i32_0 : i32, i32
  }
  func.func @transform_1(%arg0: i32) -> (i32, i32) {
    %c0_i32 = arith.constant 0 : i32
    %c0_i32_0 = arith.constant 0 : i32
    return %c0_i32, %arg0 : i32, i32
  }
  func.func @transform_2(%arg0: i32) -> (i32, i32) {
    %c0_i32 = arith.constant 0 : i32
    %c0_i32_0 = arith.constant 0 : i32
    return %c0_i32, %arg0 : i32, i32
  }
  func.func @transform_3(%arg0: i32) -> (i32, i32, i32) {
    %c0_i32 = arith.constant 0 : i32
    %c0_i32_0 = arith.constant 0 : i32
    %c0_i32_1 = arith.constant 0 : i32
    return %c0_i32, %c0_i32_0, %arg0 : i32, i32, i32
  }
  func.func @transform_4(%arg0: i32) -> (i32, i32, i32) {
    %c0_i32 = arith.constant 0 : i32
    %c0_i32_0 = arith.constant 0 : i32
    %c0_i32_1 = arith.constant 0 : i32
    return %arg0, %c0_i32, %c0_i32_0 : i32, i32, i32
  }
}

</mosaic_0001>

<bundles_post_ra>
// kernel: tpu_custom_call.1
= control target key start
LH: loop header
LB: loop body
LE: loop exit
PB: predicated region body
PF: predicated region fallthrough
CT: control target
= control target key end

     0   :  { %10 = vsyncpa [#allocation5], 0  ;;  %s541_s0 = inlined_call_operand.hbm [shape: f32[1,4], index: 0, kind: input, shape index: {}]   ;;  %s542_s1 = inlined_call_operand.hbm [shape: f32[8,256], index: 1, kind: input, shape index: {}]   ;;  %s543_s2 = inlined_call_operand.hbm [shape: s32[8,256], index: 2, kind: input, shape index: {}]   ;;  %s544_s3 = inlined_call_operand.hbm [shape: f32[5,8,256], index: 3, kind: output, shape index: {0}]   ;;  %s545_s4 = inlined_call_operand.hbm [shape: f32[1,1,256], index: 4, kind: output, shape index: {1}]  }
   0x1   :  { %11 = vsyncpa [#allocation3], 0 }
   0x2   :  { %12 = vsyncpa [#allocation8], 0 }
   0x3   :  { %13 = vsyncpa [#allocation4], 0 }
   0x4   :  { %14 = vsyncpa [#allocation11], 0  ;;  %s310_s17 = scalar_lea.hbm %s541_s0, 16 }
   0x5   :  { %p311_p0 = scmp.ne.s32.totalorder %s541_s0, %s310_s17  ;;  %p314_p1 = scmp.lt.u32.totalorder %s310_s17, %s541_s0 }
   0x7   :  { %p316_p2 = pnand %p314_p1, %p311_p0 }
   0x9   :  { %319 = shalt.err (!%p316_p2)
}
   0xa   :  { %s418_s22 = smov [#allocation2]   ;;  %s419_s25 = smov [#allocation6]  }
   0xb   :  { %22 = dma.hbm_to_smem %s541_s0, 16, %s418_s22, [#allocation5]  }
   0xc   :  { %s29_s26 = sshll.u32 %s419_s25, 4  ;;  %s420_s27 = smov [#allocation7]   ;;  %s30_s26 = int_to_ptr.vmem [resolvable:$true] %s29_s26 }
   0xd   :  { %s39_s28 = sshll.u32 %s420_s27, 4  ;;  %s320_s5 = scalar_lea.hbm %s542_s1, 256  ;;  %s40_s28 = int_to_ptr.vmem [resolvable:$true] %s39_s28 }
   0xe   :  { %p321_p3 = scmp.ne.s32.totalorder %s542_s1, %s320_s5  ;;  %p324_p4 = scmp.lt.u32.totalorder %s320_s5, %s542_s1 }
  0x10   :  { %p326_p5 = pnand %p324_p4, %p321_p3 }
  0x12   :  { %329 = shalt.err (!%p326_p5)
}
  0x13   :  { %s330_s0 = scalar_lea.vmem %s30_s26, 256  ;;  %p335_p7 = scmp.lt.s32.totalorder %s30_s26, %s30_s26 }
  0x14   :  { %p331_p6 = scmp.ne.s32.totalorder %s30_s26, %s330_s0  ;;  %p336_p8 = scmp.lt.s32.totalorder %s330_s0, %s330_s0 }
  0x16   :  { %p337_p9 = por %p336_p8, %p335_p7 }
  0x18   :  { %p338_p10 = pnand %p337_p9, %p331_p6 }
  0x1a   :  { %341 = shalt.err (!%p338_p10)
}
  0x1b   :  { %32 = dma.hbm_to_vmem [thread:$0]  %s542_s1, 256, %s30_s26, [#allocation3]  }
  0x1c   :  { %s342_s14 = scalar_lea.hbm %s543_s2, 256 }
  0x1d   :  { %p343_p11 = scmp.ne.s32.totalorder %s543_s2, %s342_s14  ;;  %p346_p12 = scmp.lt.u32.totalorder %s342_s14, %s543_s2 }
  0x1f   :  { %p348_p13 = pnand %p346_p12, %p343_p11 }
  0x21   :  { %351 = shalt.err (!%p348_p13)
}
  0x22   :  { %s352_s19 = scalar_lea.vmem %s40_s28, 256  ;;  %p357_p1 = scmp.lt.s32.totalorder %s40_s28, %s40_s28 }
  0x23   :  { %p353_p0 = scmp.ne.s32.totalorder %s40_s28, %s352_s19  ;;  %p358_p2 = scmp.lt.s32.totalorder %s352_s19, %s352_s19 }
  0x25   :  { %p359_p3 = por %p358_p2, %p357_p1 }
  0x27   :  { %p360_p4 = pnand %p359_p3, %p353_p0 }
  0x29   :  { %363 = shalt.err (!%p360_p4)
}
  0x2a   :  { %42 = dma.hbm_to_vmem [thread:$0]  %s543_s2, 256, %s40_s28, [#allocation8]  }
  0x2b   :  { %408 = dma.done.wait [#allocation5], 16  }
  0x2c   :  { %409 = vsyncadd [#allocation5], 4294967280 }
  0x2d   :  { %410 = dma.done.wait [#allocation3], 256  }
  0x2e   :  { %411 = vsyncadd [#allocation3], 4294967040 }
  0x2f   :  { %412 = dma.done.wait [#allocation8], 256  }
  0x30   :  { %413 = vsyncadd [#allocation8], 4294967040 }
  0x31   :  { %52 = sfence }
  0x32   :  { %s57_s21 = sld [smem:[#allocation2]]  ;;  %s257_s22 = sld [smem:[#allocation2 + $0x1]]  ;;  %v53_v0 = vld [vmem:[#allocation6] sm:$0xff]  ;;  %v54_v1 = vld [vmem:[#allocation6 + $0x8] sm:$0xff]  ;;  %v487_v38 = vld [vmem:[#allocation7] sm:$0xff] }
  0x33   :  { %s260_s23 = sld [smem:[#allocation2 + $0x2]]  ;;  %s263_s24 = sld [smem:[#allocation2 + $0x3]]  ;;  %v489_v40 = vld [vmem:[#allocation7 + $0x8] sm:$0xff]  ;;  %vm79_vm0 = vcmp.eq.s32.totalorder %v487_v38, 0  ;;  %vm108_vm1 = vcmp.eq.s32.totalorder %v487_v38, 1  ;;  %vm137_vm3 = vcmp.eq.s32.totalorder %v487_v38, 2 }
  0x34   :  { %vm80_vm2 = vcmp.eq.s32.totalorder %v489_v40, 0  ;;  %vm109_vm4 = vcmp.eq.s32.totalorder %v489_v40, 1  ;;  %vm138_vm5 = vcmp.eq.s32.totalorder %v489_v40, 2  ;;  %vm166_vm6 = vcmp.eq.s32.totalorder %v487_v38, 3  ;;  %s421_s2 = smov [#allocation9]  }
  0x35   :  { %vm167_vm7 = vcmp.eq.s32.totalorder %v489_v40, 3  ;;  %s227_s25 = sshll.u32 %s421_s2, 4  ;;  %vm179_vm8 = vcmp.eq.s32.totalorder %v487_v38, 4  ;;  %vm180_vm9 = vcmp.eq.s32.totalorder %v489_v40, 4  ;;  %s228_s25 = int_to_ptr.vmem [resolvable:$true] %s227_s25 }
  0x36   :  { %s364_s26 = scalar_lea.vmem %s228_s25, 1280  ;;  %p369_p6 = scmp.lt.s32.totalorder %s228_s25, %s228_s25 }
  0x37   :  { %p365_p5 = scmp.ne.s32.totalorder %s228_s25, %s364_s26  ;;  %p370_p7 = scmp.lt.s32.totalorder %s364_s26, %s364_s26 }
  0x38   :  { %v58_v2 = vstv %s57_s21  ;;  %v84_v5 = vstv %s257_s22 }
  0x39   :  { %v59_v3 = vsub.f32 %v58_v2, %v53_v0  ;;  %v60_v4 = vsub.f32 %v58_v2, %v54_v1  ;;  %v85_v6 = vsub.f32 %v84_v5, %v53_v0  ;;  %v86_v7 = vsub.f32 %v84_v5, %v54_v1  ;;  %p371_p8 = por %p370_p7, %p369_p6 }
  0x3a   :  { %v113_v8 = vstv %s260_s23  ;;  %v142_v15 = vstv %s263_s24 }
  0x3b   :  { %v255_v9 = vmul.f32 -1.442695, %v59_v3  ;;  %v256_v10 = vmul.f32 -1.442695, %v60_v4  ;;  %v114_v11 = vsub.f32 %v113_v8, %v53_v0  ;;  %v115_v12 = vsub.f32 %v113_v8, %v54_v1  ;;  %p372_p9 = pnand %p371_p8, %p365_p5 }
  0x3c   :  { %v258_v13 = vmul.f32 -1.442695, %v85_v6  ;;  %v259_v14 = vmul.f32 -1.442695, %v86_v7  ;;  %v143_v17 = vsub.f32 %v142_v15, %v53_v0  ;;  %v144_v19 = vsub.f32 %v142_v15, %v54_v1 }
  0x3d   :  { %274 = vpow2.f32 %v255_v9  ;;  %v261_v16 = vmul.f32 -1.442695, %v114_v11  ;;  %v262_v18 = vmul.f32 -1.442695, %v115_v12 }
  0x3e   :  { %276 = vpow2.f32 %v256_v10  ;;  %v264_v20 = vmul.f32 -1.442695, %v143_v17  ;;  %v265_v21 = vmul.f32 -1.442695, %v144_v19 }
  0x3f   :  { %278 = vpow2.f32 %v258_v13 }
  0x40   :  { %280 = vpow2.f32 %v259_v14 }
  0x41   :  { %282 = vpow2.f32 %v261_v16 }
  0x42   :  { %284 = vpow2.f32 %v262_v18 }
  0x43   :  { %286 = vpow2.f32 %v264_v20 }
  0x44   :  { %288 = vpow2.f32 %v265_v21 }
  0x47   :  { %v275_v22 = vpop.eup %274 }
  0x48   :  { %v277_v23 = vpop.eup %276  ;;  %v67_v24 = vadd.f32 1.0, %v275_v22 }
  0x49   :  { %v279_v25 = vpop.eup %278  ;;  %v68_v26 = vadd.f32 1.0, %v277_v23 }
  0x4a   :  { %v281_v27 = vpop.eup %280  ;;  %290 = vrcp.f32 %v67_v24  ;;  %v93_v28 = vadd.f32 1.0, %v279_v25 }
  0x4b   :  { %v283_v29 = vpop.eup %282  ;;  %292 = vrcp.f32 %v68_v26  ;;  %v94_v30 = vadd.f32 1.0, %v281_v27 }
  0x4c   :  { %v285_v31 = vpop.eup %284  ;;  %294 = vrcp.f32 %v93_v28  ;;  %v122_v32 = vadd.f32 1.0, %v283_v29 }
  0x4d   :  { %v287_v33 = vpop.eup %286  ;;  %296 = vrcp.f32 %v94_v30  ;;  %v123_v34 = vadd.f32 1.0, %v285_v31 }
  0x4e   :  { %v289_v35 = vpop.eup %288  ;;  %298 = vrcp.f32 %v122_v32  ;;  %v151_v36 = vadd.f32 1.0, %v287_v33 }
  0x4f   :  { %300 = vrcp.f32 %v123_v34  ;;  %v152_v37 = vadd.f32 1.0, %v289_v35 }
  0x50   :  { %302 = vrcp.f32 %v151_v36 }
  0x51   :  { %304 = vrcp.f32 %v152_v37 }
  0x54   :  { %v291_v39 = vpop.eup %290 }
  0x55   :  { %v293_v41 = vpop.eup %292  ;;  %v73_v42 = vmax.f32 %v291_v39, 1e-15 }
  0x56   :  { %v295_v43 = vpop.eup %294  ;;  %v74_v44 = vmax.f32 %v293_v41, 1e-15 }
  0x57   :  { %v297_v45 = vpop.eup %296  ;;  %v75_v46 = vmin.f32 %v73_v42, 1.0  ;;  %v99_v47 = vsub.f32 %v295_v43, %v291_v39 }
  0x58   :  { %v299_v48 = vpop.eup %298  ;;  %v76_v49 = vmin.f32 %v74_v44, 1.0  ;;  %v100_v50 = vsub.f32 %v297_v45, %v293_v41 }
  0x59   :  { %v301_v51 = vpop.eup %300  ;;  %77 = vst [vmem:[#allocation9] sm:$0xff] %v75_v46  ;;  %v101_v52 = vmax.f32 %v99_v47, 1e-15  ;;  %v128_v53 = vsub.f32 %v299_v48, %v295_v43  ;;  %v81_v55 = vsel %vm79_vm0, %v75_v46, 1.0 }
  0x5a   :  { %v303_v54 = vpop.eup %302  ;;  %78 = vst [vmem:[#allocation9 + $0x8] sm:$0xff] %v76_v49  ;;  %v82_v56 = vsel %vm80_vm2, %v76_v49, 1.0  ;;  %v102_v57 = vmax.f32 %v100_v50, 1e-15  ;;  %v129_v58 = vsub.f32 %v301_v51, %v297_v45 }
  0x5b   :  { %v305_v59 = vpop.eup %304  ;;  %v103_v60 = vmin.f32 %v101_v52, 1.0  ;;  %v130_v61 = vmax.f32 %v128_v53, 1e-15  ;;  %v157_v62 = vsub.f32 %v303_v54, %v299_v48  ;;  %v170_v63 = vsub.f32 1.0, %v303_v54 }
  0x5c   :  { %v104_v0 = vmin.f32 %v102_v57, 1.0  ;;  %v131_v1 = vmax.f32 %v129_v58, 1e-15  ;;  %v158_v2 = vsub.f32 %v305_v59, %v301_v51  ;;  %v171_v3 = vsub.f32 1.0, %v305_v59 }
  0x5d   :  { %106 = vst [vmem:[#allocation9 + $0x10] sm:$0xff] %v103_v60  ;;  %v110_v4 = vsel %vm108_vm1, %v103_v60, %v81_v55  ;;  %v132_v5 = vmin.f32 %v130_v61, 1.0  ;;  %v159_v6 = vmax.f32 %v157_v62, 1e-15  ;;  %v172_v7 = vmax.f32 %v170_v63, 1e-15 }
  0x5e   :  { %107 = vst [vmem:[#allocation9 + $0x18] sm:$0xff] %v104_v0  ;;  %v111_v8 = vsel %vm109_vm4, %v104_v0, %v82_v56  ;;  %v133_v9 = vmin.f32 %v131_v1, 1.0  ;;  %v160_v10 = vmax.f32 %v158_v2, 1e-15  ;;  %v173_v11 = vmax.f32 %v171_v3, 1e-15 }
  0x5f   :  { %135 = vst [vmem:[#allocation9 + $0x20] sm:$0xff] %v132_v5  ;;  %v139_v12 = vsel %vm137_vm3, %v132_v5, %v110_v4  ;;  %v161_v13 = vmin.f32 %v159_v6, 1.0  ;;  %v174_v14 = vmin.f32 %v172_v7, 1.0 }
  0x60   :  { %136 = vst [vmem:[#allocation9 + $0x28] sm:$0xff] %v133_v9  ;;  %v140_v15 = vsel %vm138_vm5, %v133_v9, %v111_v8  ;;  %v162_v16 = vmin.f32 %v160_v10, 1.0  ;;  %v175_v17 = vmin.f32 %v173_v11, 1.0 }
  0x61   :  { %164 = vst [vmem:[#allocation9 + $0x30] sm:$0xff] %v161_v13  ;;  %v168_v18 = vsel %vm166_vm6, %v161_v13, %v139_v12  ;;  %177 = vst [vmem:[#allocation9 + $0x40] sm:$0xff] %v174_v14 }
  0x62   :  { %165 = vst [vmem:[#allocation9 + $0x38] sm:$0xff] %v162_v16  ;;  %v169_v19 = vsel %vm167_vm7, %v162_v16, %v140_v15  ;;  %v181_v20 = vsel %vm179_vm8, %v174_v14, %v168_v18  ;;  %178 = vst [vmem:[#allocation9 + $0x48] sm:$0xff] %v175_v17 }
  0x63   :  { %306 = vlog2.f32 %v181_v20  ;;  %v182_v21 = vsel %vm180_vm9, %v175_v17, %v169_v19 }
  0x64   :  { %375 = shalt.err (!%p372_p9)
}
  0x65   :  { %s376_s29 = scalar_lea.hbm %s544_s3, 1280 }
  0x66   :  { %p377_p10 = scmp.ne.s32.totalorder %s544_s3, %s376_s29  ;;  %p380_p11 = scmp.lt.u32.totalorder %s376_s29, %s544_s3 }
  0x68   :  { %p382_p12 = pnand %p380_p11, %p377_p10 }
  0x6a   :  { %385 = shalt.err (!%p382_p12)
}
  0x6b   :  { %s422_s8 = smov 256   ;;  %s423_s9 = smov 16   ;;  %308 = vlog2.f32 %v182_v21  ;;  %v424_v30 = vmov 1966171168   ;;  %v205_v32 = vlaneseq }
  0x6c   :  { %233 = dma.vmem_to_hbm [thread:$0]  %s228_s25, 1280, %s544_s3, [#allocation4], %s422_s8, %s422_s8, %s423_s9   ;;  %v203_v31 = vunpack.c.l.s4 %v424_v30 }
  0x6d   :  { %v307_v22 = vpop.eup %306  ;;  %v206_v38 = vshrl.u32 %v205_v32, 7  ;;  %s425_s3 = smov [#allocation10]   ;;  %vm219_vm10 = vcmp.lt.s32.totalorder %v205_v32, 256 }
  0x6e   :  { %v184_v24 = vmul.f32 0.6931472, %v307_v22  ;;  %v204_v37 = vunpack.c.0.s8 %v203_v31  ;;  %s240_s11 = sshll.u32 %s425_s3, 4  ;;  %s241_s11 = int_to_ptr.vmem [resolvable:$true] %s240_s11 }
  0x6f   :  { %s386_s12 = scalar_lea.vmem %s241_s11, 32  ;;  %p391_p0 = scmp.lt.s32.totalorder %s241_s11, %s241_s11 }
  0x70   :  { %v187_v26 = vrot.slane %v184_v24, 4  ;;  %v207_v43 = vsub.s32 %v204_v37, %v206_v38  ;;  %p387_p13 = scmp.ne.s32.totalorder %s241_s11, %s386_s12  ;;  %p392_p1 = scmp.lt.s32.totalorder %s386_s12, %s386_s12 }
  0x72   :  { %v188_v28 = vadd.f32 %v187_v26, %v184_v24  ;;  %p393_p2 = por %p392_p1, %p391_p0 }
  0x74   :  { %v189_v33 = vrot.slane %v188_v28, 2  ;;  %p394_p3 = pnand %p393_p2, %p387_p13 }
  0x75   :  { %v309_v23 = vpop.eup %308 }
  0x76   :  { %v186_v25 = vmul.f32 0.6931472, %v309_v23  ;;  %v190_v35 = vadd.f32 %v189_v33, %v188_v28 }
  0x78   :  { %v193_v27 = vrot.slane %v186_v25, 4  ;;  %v191_v39 = vrot.slane %v190_v35, 1 }
  0x7a   :  { %v194_v29 = vadd.f32 %v193_v27, %v186_v25  ;;  %v192_v41 = vadd.f32 %v191_v39, %v190_v35 }
  0x7c   :  { %v195_v34 = vrot.slane %v194_v29, 2 }
  0x7e   :  { %v196_v36 = vadd.f32 %v195_v34, %v194_v29 }
  0x80   :  { %v197_v40 = vrot.slane %v196_v36, 1 }
  0x82   :  { %v198_v42 = vadd.f32 %v197_v40, %v196_v36 }
  0x84   :  { %v201_v44 = vcombine.low %v192_v41, %v198_v42 }
  0x86   :  { %v208_v45 = vrot.slane %v201_v44, %v207_v43 }
  0x88   :  { %v215_v46 = vrot.slane %v208_v45, %v207_v43 }
  0x8a   :  { %221 = vst.msk [vmem:[#allocation10] sm:$0x3] %vm219_vm10, %v215_v46 }
  0x8b   :  { %397 = shalt.err (!%p394_p3)
}
  0x8c   :  { %s398_s15 = scalar_lea.hbm %s545_s4, 32 }
  0x8d   :  { %p399_p4 = scmp.ne.s32.totalorder %s545_s4, %s398_s15  ;;  %p402_p5 = scmp.lt.u32.totalorder %s398_s15, %s545_s4 }
  0x8f   :  { %p404_p6 = pnand %p402_p5, %p399_p4 }
  0x91   :  { %407 = shalt.err (!%p404_p6)
}
  0x92   :  { %243 = dma.vmem_to_hbm [thread:$0]  %s241_s11, 32, %s545_s4, [#allocation11]  }
  0x93   :  { %414 = dma.done.wait [#allocation4], 1280  }
  0x94   :  { %415 = vsyncadd [#allocation4], 4294966016 }
  0x95   :  { %416 = dma.done.wait [#allocation11], 32  }
  0x96   :  { %417 = vsyncadd [#allocation11], 4294967264 }
  0x97   :  { %250 = vsyncpa [#allocation3], 1 }
  0x98   :  { %251 = vsyncpa [#allocation8], 1 }
  0x99   :  { %252 = vsyncpa [#allocation4], 1 }
  0x9a   :  { %253 = vsyncpa [#allocation11], 1 }
  0x9b   :  { %254 = vsyncpa [#allocation5], 1 }

</bundles_post_ra>
